<compile_context>
chip_gen: v5e
topology: v5e:2x2
jax: 0.10.0
libtpu: 0.0.40
codegen_flags: <defaults>
</compile_context>

<pallas_src>
import functools

import jax
import jax.numpy as jnp
from jax.experimental import pallas as pl
from jax.experimental.pallas import tpu as pltpu


def _round_up(x, m):
    return ((x + m - 1) // m) * m


def _critic_kernel(x_ref, w1_ref, b1_ref, w2_ref, b2_ref, w3_ref, b3_ref, o_ref):
    # Layer 1: single MXU dot over K = obs_dim + act_dim (x is pre-concatenated).
    h1 = jnp.dot(x_ref[...], w1_ref[...], preferred_element_type=jnp.float32) + b1_ref[...]
    h1 = jnp.maximum(h1, 0.0)

    # Layer 2 (cast activations back to the compute dtype so the MXU runs bf16 when enabled).
    h2 = jnp.dot(h1.astype(w2_ref.dtype), w2_ref[...],
                 preferred_element_type=jnp.float32) + b2_ref[...]
    h2 = jnp.maximum(h2, 0.0)

    # Layer 3: (H2 -> 1) as VPU multiply + XLU row-reduce; (TB, 1) output block
    # -> only 4 B/row leave the chip, no 128-lane padded output.
    q = jnp.sum(h2 * w3_ref[...], axis=-1, keepdims=True) + b3_ref[...]
    o_ref[...] = q.astype(o_ref.dtype)


def pack_params(params, compute_dtype=jnp.bfloat16):
    """One-time layout packing (hoisted out of the per-call path).

    params: PyTorch-style (w1 (d_in,H1), b1 (1,H1), w2 (H1,H2), b2 (1,H2), w3 (H2,1), b3 (1,1))
    Returns kernel-layout params:
      (w1 (d_in,H1) compute_dtype, b1 f32, w2 compute_dtype, b2 f32, w3_row (1,H2) f32, b3 (1,1) f32)
    """
    w1, b1, w2, b2, w3, b3 = params
    return (
        w1.astype(compute_dtype),
        b1.astype(jnp.float32),
        w2.astype(compute_dtype),
        b2.astype(jnp.float32),
        w3.T.astype(jnp.float32),          # (1, H2) row vector for the VPU/XLU final layer
        b3.reshape(1, 1).astype(jnp.float32),
    )


@functools.partial(jax.jit, static_argnames=("block_b",))
def critic_forward(obs, act, kernel_params, *, block_b=1024):
    """obs: (B, obs_dim), act: (B, act_dim) -> Q: (B, 1) float32."""
    w1, b1, w2, b2, w3_row, b3 = kernel_params
    B = obs.shape[0]
    d_in, H1 = w1.shape
    H2 = w2.shape[1]
    compute_dtype = w1.dtype
    dsize = jnp.dtype(compute_dtype).itemsize

    # Single fused concat + cast in the wrapper: one tiny (B, d_in) XLA pass that feeds
    # the kernel a compute-dtype input (no standalone astype copy, no jnp.pad copy).
    x = jnp.concatenate([obs, act], axis=-1).astype(compute_dtype)

    # Batch tile: sublane-aligned, capped at block_b; for large B this yields >= 2 grid
    # steps so the "parallel" batch axis can shard across both v7x TensorCores.
    tb = max(8, min(block_b, _round_up(pl.cdiv(B, 2), 8)))
    grid = (pl.cdiv(B, tb),)  # ragged last block allowed: rows are independent, tail masked

    const_spec = lambda shape: pl.BlockSpec(shape, lambda i: (0, 0))  # resident across steps

    cost = pl.CostEstimate(
        flops=2 * B * (d_in * H1 + H1 * H2 + H2),
        transcendentals=0,
        bytes_accessed=B * (d_in * dsize + 4)
        + (d_in * H1 + H1 * H2) * dsize
        + (H1 + H2 + H2 + 1) * 4,
    )

    q = pl.pallas_call(
        _critic_kernel,
        out_shape=jax.ShapeDtypeStruct((B, 1), jnp.float32),
        grid=grid,
        in_specs=[
            pl.BlockSpec((tb, d_in), lambda i: (i, 0)),   # x tile (batch-tiled)
            const_spec((d_in, H1)),                       # W1
            const_spec((1, H1)),                          # b1
            const_spec((H1, H2)),                         # W2
            const_spec((1, H2)),                          # b2
            const_spec((1, H2)),                          # w3 row
            const_spec((1, 1)),                           # b3
        ],
        out_specs=pl.BlockSpec((tb, 1), lambda i: (i, 0)),
        compiler_params=pltpu.CompilerParams(
            dimension_semantics=("parallel",),
        ),
        cost_estimate=cost,
    )(x, w1, b1, w2, b2, w3_row, b3)

    return q


def init_params(key, obs_dim, action_dim, hidden_dims=(128, 128)):
    """Deterministic init mimicking nn.Linear's U(-1/sqrt(fan_in), 1/sqrt(fan_in)).

    Returns PyTorch-equivalent layout: w (in_dim, out_dim), b (1, out_dim).
    """
    d_in = obs_dim + action_dim
    dims = [d_in, *hidden_dims, 1]
    params = []
    for i in range(len(dims) - 1):
        fan_in, fan_out = dims[i], dims[i + 1]
        key, kw, kb = jax.random.split(key, 3)
        bound = 1.0 / (fan_in ** 0.5)
        w = jax.random.uniform(kw, (fan_in, fan_out), jnp.float32, -bound, bound)
        b = jax.random.uniform(kb, (1, fan_out), jnp.float32, -bound, bound)
        params.extend([w, b])
    return tuple(params)


def critic_reference(obs, act, params):
    """Pure-JAX f32 reference of the PyTorch forward pass."""
    w1, b1, w2, b2, w3, b3 = params
    x = jnp.concatenate([obs, act], axis=-1)
    h1 = jnp.maximum(x @ w1 + b1, 0.0)
    h2 = jnp.maximum(h1 @ w2 + b2, 0.0)
    return h2 @ w3 + b3


if __name__ == "__main__":
    key = jax.random.PRNGKey(0)
    B, obs_dim, act_dim = 8, 16, 16

    k_obs, k_act, k_params = jax.random.split(key, 3)
    obs = jax.random.normal(k_obs, (B, obs_dim), jnp.float32)
    act = jax.random.normal(k_act, (B, act_dim), jnp.float32)

    params = init_params(k_params, obs_dim, act_dim, hidden_dims=(128, 128))
    q_ref = critic_reference(obs, act, params)

    # f32 path: exact check of kernel structure (tight tolerance).
    kp_f32 = pack_params(params, compute_dtype=jnp.float32)
    q_f32 = jax.block_until_ready(critic_forward(obs, act, kp_f32))
    assert q_f32.shape == (B, 1), q_f32.shape
    assert jnp.allclose(q_f32, q_ref, atol=1e-5, rtol=1e-5), (q_f32, q_ref)

    # bf16 default path: looser tolerance (bf16 MXU inputs, f32 accumulation).
    kp_bf16 = pack_params(params)  # default compute_dtype = bf16
    q_bf16 = jax.block_until_ready(critic_forward(obs, act, kp_bf16))
    assert q_bf16.shape == (B, 1), q_bf16.shape
    assert jnp.allclose(q_bf16, q_ref, atol=5e-2, rtol=5e-2), (q_bf16, q_ref)

    print("KERNEL_OK")
</pallas_src>

<mosaic_0001>
module attributes {stable_mosaic.version = 11 : i64} {
  func.func @_critic_kernel(%arg0: i32, %arg1: memref<8x32xf32, #tpu.memory_space<vmem>>, %arg2: memref<32x128xf32, #tpu.memory_space<vmem>>, %arg3: memref<1x128xf32, #tpu.memory_space<vmem>>, %arg4: memref<128x128xf32, #tpu.memory_space<vmem>>, %arg5: memref<1x128xf32, #tpu.memory_space<vmem>>, %arg6: memref<1x128xf32, #tpu.memory_space<vmem>>, %arg7: memref<1x1xf32, #tpu.memory_space<vmem>>, %arg8: memref<8x1xf32, #tpu.memory_space<vmem>>) attributes {dimension_semantics = [#tpu.dimension_semantics<parallel>], iteration_bounds = array<i64: 1>, scalar_prefetch = 0 : i64, scratch_operands = 0 : i64, tpu.core_type = #tpu.core_type<tc>, window_params = [{transform_indices = @transform_0, window_bounds = array<i64: 8, 32>}, {pipeline_mode = #tpu.pipeline_mode<synchronous>, transform_indices = @transform_1, window_bounds = array<i64: 32, 128>}, {pipeline_mode = #tpu.pipeline_mode<synchronous>, transform_indices = @transform_2, window_bounds = array<i64: 1, 128>}, {pipeline_mode = #tpu.pipeline_mode<synchronous>, transform_indices = @transform_3, window_bounds = array<i64: 128, 128>}, {pipeline_mode = #tpu.pipeline_mode<synchronous>, transform_indices = @transform_4, window_bounds = array<i64: 1, 128>}, {pipeline_mode = #tpu.pipeline_mode<synchronous>, transform_indices = @transform_5, window_bounds = array<i64: 1, 128>}, {pipeline_mode = #tpu.pipeline_mode<synchronous>, transform_indices = @transform_6, window_bounds = array<i64: 1, 1>}, {transform_indices = @transform_7, window_bounds = array<i64: 8, 1>}]} {
    %c0 = arith.constant 0 : index
    %c0_0 = arith.constant 0 : index
    %0 = vector.load %arg1[%c0, %c0_0] : memref<8x32xf32, #tpu.memory_space<vmem>>, vector<8x32xf32>
    %c0_1 = arith.constant 0 : index
    %c0_2 = arith.constant 0 : index
    %1 = vector.load %arg2[%c0_1, %c0_2] : memref<32x128xf32, #tpu.memory_space<vmem>>, vector<32x128xf32>
    %cst = arith.constant dense<0.000000e+00> : vector<8x128xf32>
    %2 = tpu.matmul %0, %1, %cst {dimension_numbers = #tpu.dot_dimension_numbers<[1], [0], [0], [1], [0, 0, 1, 1], [], []>} : vector<8x32xf32>, vector<32x128xf32>, vector<8x128xf32> -> vector<8x128xf32>
    %c0_3 = arith.constant 0 : index
    %c0_4 = arith.constant 0 : index
    %3 = vector.load %arg3[%c0_3, %c0_4] : memref<1x128xf32, #tpu.memory_space<vmem>>, vector<1x128xf32>
    %4 = vector.broadcast %3 : vector<1x128xf32> to vector<8x128xf32>
    %5 = arith.addf %2, %4 : vector<8x128xf32>
    %cst_5 = arith.constant 0.000000e+00 : f32
    %6 = vector.broadcast %cst_5 : f32 to vector<8x128xf32>
    %7 = arith.maximumf %5, %6 : vector<8x128xf32>
    %c0_6 = arith.constant 0 : index
    %c0_7 = arith.constant 0 : index
    %8 = vector.load %arg4[%c0_6, %c0_7] : memref<128x128xf32, #tpu.memory_space<vmem>>, vector<128x128xf32>
    %cst_8 = arith.constant dense<0.000000e+00> : vector<8x128xf32>
    %9 = tpu.matmul %7, %8, %cst_8 {dimension_numbers = #tpu.dot_dimension_numbers<[1], [0], [0], [1], [0, 0, 1, 1], [], []>} : vector<8x128xf32>, vector<128x128xf32>, vector<8x128xf32> -> vector<8x128xf32>
    %c0_9 = arith.constant 0 : index
    %c0_10 = arith.constant 0 : index
    %10 = vector.load %arg5[%c0_9, %c0_10] : memref<1x128xf32, #tpu.memory_space<vmem>>, vector<1x128xf32>
    %11 = vector.broadcast %10 : vector<1x128xf32> to vector<8x128xf32>
    %12 = arith.addf %9, %11 : vector<8x128xf32>
    %cst_11 = arith.constant 0.000000e+00 : f32
    %13 = vector.broadcast %cst_11 : f32 to vector<8x128xf32>
    %14 = arith.maximumf %12, %13 : vector<8x128xf32>
    %c0_12 = arith.constant 0 : index
    %c0_13 = arith.constant 0 : index
    %15 = vector.load %arg6[%c0_12, %c0_13] : memref<1x128xf32, #tpu.memory_space<vmem>>, vector<1x128xf32>
    %16 = vector.broadcast %15 : vector<1x128xf32> to vector<8x128xf32>
    %17 = arith.mulf %14, %16 : vector<8x128xf32>
    %cst_14 = arith.constant dense<0.000000e+00> : vector<8xf32>
    %18 = vector.multi_reduction <add>, %17, %cst_14 [1] : vector<8x128xf32> to vector<8xf32>
    %19 = vector.shape_cast %18 : vector<8xf32> to vector<8x1xf32>
    %c0_15 = arith.constant 0 : index
    %c0_16 = arith.constant 0 : index
    %20 = vector.load %arg7[%c0_15, %c0_16] : memref<1x1xf32, #tpu.memory_space<vmem>>, vector<1x1xf32>
    %21 = vector.broadcast %20 : vector<1x1xf32> to vector<8x1xf32>
    %22 = arith.addf %19, %21 : vector<8x1xf32>
    %c0_17 = arith.constant 0 : index
    %c0_18 = arith.constant 0 : index
    %23 = vector.load %arg8[%c0_17, %c0_18] : memref<8x1xf32, #tpu.memory_space<vmem>>, vector<8x1xf32>
    tpu.vector_store %arg8[%c0_17, %c0_18], %22 {strides = array<i32>} : memref<8x1xf32, #tpu.memory_space<vmem>>, vector<8x1xf32>,
    return
  }
  func.func @transform_0(%arg0: i32) -> (i32, i32) {
    %c0_i32 = arith.constant 0 : i32
    %c0_i32_0 = arith.constant 0 : i32
    return %arg0, %c0_i32 : i32, i32
  }
  func.func @transform_1(%arg0: i32) -> (i32, i32) {
    %c0_i32 = arith.constant 0 : i32
    %c0_i32_0 = arith.constant 0 : i32
    %c0_i32_1 = arith.constant 0 : i32
    return %c0_i32, %c0_i32_0 : i32, i32
  }
  func.func @transform_2(%arg0: i32) -> (i32, i32) {
    %c0_i32 = arith.constant 0 : i32
    %c0_i32_0 = arith.constant 0 : i32
    %c0_i32_1 = arith.constant 0 : i32
    return %c0_i32, %c0_i32_0 : i32, i32
  }
  func.func @transform_3(%arg0: i32) -> (i32, i32) {
    %c0_i32 = arith.constant 0 : i32
    %c0_i32_0 = arith.constant 0 : i32
    %c0_i32_1 = arith.constant 0 : i32
    return %c0_i32, %c0_i32_0 : i32, i32
  }
  func.func @transform_4(%arg0: i32) -> (i32, i32) {
    %c0_i32 = arith.constant 0 : i32
    %c0_i32_0 = arith.constant 0 : i32
    %c0_i32_1 = arith.constant 0 : i32
    return %c0_i32, %c0_i32_0 : i32, i32
  }
  func.func @transform_5(%arg0: i32) -> (i32, i32) {
    %c0_i32 = arith.constant 0 : i32
    %c0_i32_0 = arith.constant 0 : i32
    %c0_i32_1 = arith.constant 0 : i32
    return %c0_i32, %c0_i32_0 : i32, i32
  }
  func.func @transform_6(%arg0: i32) -> (i32, i32) {
    %c0_i32 = arith.constant 0 : i32
    %c0_i32_0 = arith.constant 0 : i32
    %c0_i32_1 = arith.constant 0 : i32
    return %c0_i32, %c0_i32_0 : i32, i32
  }
  func.func @transform_7(%arg0: i32) -> (i32, i32) {
    %c0_i32 = arith.constant 0 : i32
    %c0_i32_0 = arith.constant 0 : i32
    return %arg0, %c0_i32 : i32, i32
  }
}

</mosaic_0001>

<bundles_post_ra>
// kernel: critic_forward.1
= control target key start
LH: loop header
LB: loop body
LE: loop exit
PB: predicated region body
PF: predicated region fallthrough
CT: control target
= control target key end

     0   :  { %s284_s0 = inlined_call_operand.vmem [shape: f32[8,32], index: 0, kind: input, shape index: {}]   ;;  %s285_s1 = inlined_call_operand.hbm [shape: f32[32,128], index: 1, kind: input, shape index: {}]   ;;  %s286_s2 = inlined_call_operand.vmem [shape: f32[1,128], index: 2, kind: input, shape index: {}]   ;;  %s287_s3 = inlined_call_operand.hbm [shape: f32[128,128], index: 3, kind: input, shape index: {}]   ;;  %s288_s4 = inlined_call_operand.vmem [shape: f32[1,128], index: 4, kind: input, shape index: {}]   ;;  %s289_s5 = inlined_call_operand.vmem [shape: f32[1,128], index: 5, kind: input, shape index: {}]   ;;  %s290_s6 = inlined_call_operand.<no memory space> [shape: f32[1,1], index: 6, kind: input, shape index: {}]   ;;  %s291_s7 = inlined_call_operand.vmem [shape: f32[8,1], index: 7, kind: output, shape index: {}]  }
   0x1   :  { %v12_v0 = vstv %s290_s6 }
   0x2   :  { %13 = vst [vmem:[#allocation2] sm:$0x1] %v12_v0 }
   0x3   :  { %14 = vsyncpa [#allocation4], 0  ;;  %s22_s28 = sshll.u32 %s285_s1, 4  ;;  %s23_s28 = int_to_ptr.hbm [resolvable:$true] %s22_s28 }
   0x4   :  { %15 = vsyncpa [#allocation6], 0  ;;  %s216_s29 = smov [#allocation3]   ;;  %s37_s10 = sshll.u32 %s287_s3, 4  ;;  %s38_s10 = int_to_ptr.hbm [resolvable:$true] %s37_s10 }
   0x5   :  { %s24_s30 = sshll.u32 %s216_s29, 4  ;;  %s217_s11 = smov 128   ;;  %s25_s30 = int_to_ptr.vmem [resolvable:$true] %s24_s30 }
   0x6   :  { %s218_s12 = smov 8   ;;  %s219_s6 = smov [#allocation5]  }
   0x7   :  { %30 = dma.hbm_to_vmem [thread:$0]  %s23_s28, 512, %s25_s30, [#allocation4], %s217_s11, %s217_s11, %s218_s12  }
   0x8   :  { %s39_s13 = sshll.u32 %s219_s6, 4  ;;  %s40_s13 = int_to_ptr.vmem [resolvable:$true] %s39_s13 }
   0x9   :  { %45 = dma.hbm_to_vmem [thread:$0]  %s38_s10, 2048, %s40_s13, [#allocation6], %s217_s11, %s217_s11, %s218_s12  }
   0xa   :  { %212 = dma.done.wait [#allocation4], 512  }
   0xb   :  { %213 = vsyncadd [#allocation4], 4294966784 }
   0xc   :  { %214 = dma.done.wait [#allocation6], 2048  }
   0xd   :  { %215 = vsyncadd [#allocation6], 4294965248  ;;  %v64_v1 = vld [vmem:[#allocation3 + $0x18] sm:$0xff]  ;;  %v63_v2 = vld [vmem:[#allocation3 + $0x10] sm:$0xff]  ;;  %vm69_vm0 = vcmask 261120   ;;  %vm147_vm1 = vcmask 7168  }
   0xe   :  { %85 = vmatpush.msra.mxu0 %v64_v1  ;;  %v109_v3 = vld [vmem:[#allocation5 + $0x78] sm:$0xff]  ;;  %v62_v4 = vld [vmem:[#allocation3 + $0x8] sm:$0xff]  ;;  %v108_v5 = vld [vmem:[#allocation5 + $0x70] sm:$0xff] }
   0xf   :  { %114 = vmatpush.msra.mxu1 %v109_v3  ;;  %v107_v6 = vld [vmem:[#allocation5 + $0x68] sm:$0xff]  ;;  %v61_v7 = vld [vmem:[#allocation3] sm:$0xff]  ;;  %v105_v10 = vld [vmem:[#allocation5 + $0x58] sm:$0xff] }
  0x10   :  { %86 = vmatpush.msra.mxu0 %v63_v2  ;;  %v60_v8 = vld [vmem:[%s284_s0] sm:$0xff]  ;;  %v104_v11 = vld [vmem:[#allocation5 + $0x50] sm:$0xff]  ;;  %v103_v12 = vld [vmem:[#allocation5 + $0x48] sm:$0xff] }
  0x11   :  { %115 = vmatpush.msra.mxu1 %v108_v5  ;;  %v106_v9 = vld [vmem:[#allocation5 + $0x60] sm:$0xff]  ;;  %v101_v14 = vld [vmem:[#allocation5 + $0x38] sm:$0xff]  ;;  %v100_v15 = vld [vmem:[#allocation5 + $0x30] sm:$0xff] }
  0x12   :  { %87 = vmatpush.msra.mxu0 %v62_v4  ;;  %v102_v13 = vld [vmem:[#allocation5 + $0x40] sm:$0xff]  ;;  %v99_v16 = vld [vmem:[#allocation5 + $0x28] sm:$0xff]  ;;  %v97_v18 = vld [vmem:[#allocation5 + $0x18] sm:$0xff] }
  0x13   :  { %116 = vmatpush.msra.mxu1 %v107_v6  ;;  %v98_v17 = vld [vmem:[#allocation5 + $0x20] sm:$0xff]  ;;  %v96_v19 = vld [vmem:[#allocation5 + $0x10] sm:$0xff]  ;;  %v95_v20 = vld [vmem:[#allocation5 + $0x8] sm:$0xff] }
  0x14   :  { %88 = vmatpush.msra.mxu0 %v61_v7  ;;  %v94_v21 = vld [vmem:[#allocation5] sm:$0xff]  ;;  %v160_v22 = vld [vmem:[%s286_s2] ss:$0 sm:$0xff] }
  0x15   :  { %155 = vmatmul.msk.f32.vlgmr.msra.gmra.mxu0 %vm69_vm0, %v60_v8  ;;  %117 = vmatpush.msra.mxu1 %v106_v9  ;;  %v161_v26 = vld [vmem:[%s288_s4] ss:$0 sm:$0xff] }
  0x16   :  { %v162_v29 = vld [vmem:[%s289_s5] ss:$0 sm:$0xff] }
  0x17   :  { %118 = vmatpush.msra.mxu1 %v105_v10  ;;  %v163_v32 = vld [vmem:[#allocation2] ss:$0 sm:$0xff] }
  0x19   :  { %119 = vmatpush.msra.mxu1 %v104_v11 }
  0x1b   :  { %120 = vmatpush.msra.mxu1 %v103_v12 }
  0x1d   :  { %121 = vmatpush.msra.mxu1 %v102_v13 }
  0x1f   :  { %122 = vmatpush.msra.mxu1 %v101_v14 }
  0x21   :  { %123 = vmatpush.msra.mxu1 %v100_v15 }
  0x23   :  { %124 = vmatpush.msra.mxu1 %v99_v16 }
  0x25   :  { %125 = vmatpush.msra.mxu1 %v98_v17 }
  0x27   :  { %126 = vmatpush.msra.mxu1 %v97_v18 }
  0x29   :  { %127 = vmatpush.msra.mxu1 %v96_v19 }
  0x2b   :  { %128 = vmatpush.msra.mxu1 %v95_v20 }
  0x2d   :  { %129 = vmatpush.msra.mxu1 %v94_v21 }
  0x92   :  { %v90_v23 = vpop.f32.mrf.mxu0 }
  0x93   :  { %v91_v24 = vadd.f32 %v160_v22, %v90_v23 }
  0x95   :  { %v93_v25 = vmax.f32 %v91_v24, 0.0 }
  0x97   :  { %130 = vmatmul.f32.vlgmr.msra.gmra.mxu1 %v93_v25 }
 0x114   :  { %v131_v27 = vpop.f32.mrf.mxu1 }
 0x115   :  { %v132_v28 = vadd.f32 %v161_v26, %v131_v27 }
 0x117   :  { %v134_v30 = vmax.f32 %v132_v28, 0.0 }
 0x119   :  { %v139_v31 = vmul.f32 %v162_v29, %v134_v30 }
 0x11b   :  { %140 = vadd.xlane.f32.xlu0 %v139_v31 }
 0x18e   :  { %v141_v33 = vpop.xlane.xlu0 %140 }
 0x18f   :  { %v146_v34 = vadd.f32 %v163_v32, %v141_v33 }
 0x191   :  { %148 = vst.msk [vmem:[%s291_s7] sm:$0xff] %vm147_vm1, %v146_v34 }
 0x192   :  { %153 = vsyncpa [#allocation4], 1 }
 0x193   :  { %154 = vsyncpa [#allocation6], 1 }

</bundles_post_ra>
